<compile_context>
chip_gen: v7x
topology: tpu7x:2x2x1
jax: 0.10.0
libtpu: 0.0.40
codegen_flags: <defaults>
</compile_context>

<pallas_src>
import functools

import jax
import jax.numpy as jnp
from jax import lax
from jax.experimental import pallas as pl
from jax.experimental.pallas import tpu as pltpu


_DEFAULT_TILE_N = 2048  # ~0.5-1 MiB logits buffer per step; well inside scoped VMEM


def _n_eff_from_epoch(n, t, epoch):
    """Static (Python-level) dispatch, mirrors PTCEplus.__init__."""
    if epoch < 1:
        return 0
    elif 1 <= epoch <= t:
        return int(n * (t - epoch) / t + 1)
    else:  # epoch > t
        return 1


def _ptce_kernel(n_eff, logits_ref, labels_ref, loss_ref):
    """Per-sample TCEplus(n_eff) loss for one batch tile.

    logits_ref: (TILE_N, C) native dtype, labels_ref: (TILE_N, 1) int32,
    loss_ref:   (TILE_N, 1) float32.
    """
    logits = logits_ref[...].astype(jnp.float32)          # upcast in-register
    tn, c = logits.shape

    # Numerically-stable softmax statistics over the class (lane) axis.
    m = jnp.max(logits, axis=1, keepdims=True)             # (TILE_N, 1)
    e = jnp.exp(logits - m)                                 # (TILE_N, C)
    s = jnp.sum(e, axis=1, keepdims=True)                   # (TILE_N, 1)

    # Gather the true-class entry via a masked reduction (no one-hot f32 tile,
    # no MXU op for tiny C).
    cls_ids = lax.broadcasted_iota(jnp.int32, (tn, c), 1)
    mask = labels_ref[...] == cls_ids                       # (TILE_N, C) bool

    e_y = jnp.sum(jnp.where(mask, e, 0.0), axis=1, keepdims=True)   # exp(logit_y - m)
    p_y = e_y * pl.reciprocal(s, approx=True)               # softmax prob of true class
    x = 1.0 - p_y                                           # per-sample MAE

    if n_eff == 0:
        # CrossEntropy + MAE.  CE = -(logit_y - m - log(s)) = log(s) + m - logit_y
        logit_y = jnp.sum(jnp.where(mask, logits, 0.0), axis=1, keepdims=True)
        ce = jnp.log(s) + m - logit_y
        loss = ce + x
    elif n_eff == 1:
        loss = x
    else:
        # MAE('none') term plus the truncated Taylor series sum_{k=1..n} x^k / k
        loss = x + x                                         # MAE + k=1 term
        pt = x
        for k in range(2, n_eff + 1):
            pt = pt * x
            loss = loss + pt * (1.0 / k)

    loss_ref[...] = loss


def _tceplus_per_sample(logits, labels, n_eff, tile_n=_DEFAULT_TILE_N):
    """Returns per-sample loss, shape (N,), float32."""
    n_rows, num_classes = logits.shape
    labels2d = labels.reshape(n_rows, 1).astype(jnp.int32)

    if n_rows <= tile_n:
        tile = n_rows                 # single block == full array dims (always legal)
        n_pad = n_rows
    else:
        tile = tile_n                 # multiple of 8 -> satisfies sublane tiling
        n_pad = ((n_rows + tile - 1) // tile) * tile
        if n_pad != n_rows:
            logits = jnp.pad(logits, ((0, n_pad - n_rows), (0, 0)))
            labels2d = jnp.pad(labels2d, ((0, n_pad - n_rows), (0, 0)))

    loss = pl.pallas_call(
        functools.partial(_ptce_kernel, n_eff),
        out_shape=jax.ShapeDtypeStruct((n_pad, 1), jnp.float32),
        grid=(n_pad // tile,),
        in_specs=[
            pl.BlockSpec((tile, num_classes), lambda i: (i, 0)),   # logits, native dtype
            pl.BlockSpec((tile, 1), lambda i: (i, 0)),             # labels
        ],
        out_specs=pl.BlockSpec((tile, 1), lambda i: (i, 0)),
        compiler_params=pltpu.CompilerParams(
            dimension_semantics=("parallel",)),   # independent tiles -> megacore on v7x
    )(logits, labels2d)

    return loss[:n_rows, 0]


def ptceplus_loss(logits, labels, *, n, t, epoch, reduction="mean",
                  tile_n=_DEFAULT_TILE_N):
    """PTCEplus(n, t, epoch)(logits, labels, reduction)."""
    n_eff = _n_eff_from_epoch(n, t, epoch)
    per_sample = _tceplus_per_sample(logits, labels, n_eff, tile_n)
    # TODO(synk): the scalar 'mean' reduction is trivial glue done in plain JAX.
    if reduction == "mean":
        return per_sample.mean()
    elif reduction == "none":
        return per_sample
    else:
        raise ValueError("reduction should be mean or none")


# ------------------------- pure-JAX reference ------------------------------
def _reference_ptceplus(logits, labels, *, n, t, epoch, reduction="mean"):
    n_eff = _n_eff_from_epoch(n, t, epoch)
    lg = logits.astype(jnp.float32)
    logp = jax.nn.log_softmax(lg, axis=1)
    probs = jnp.exp(logp)
    idx = labels[:, None].astype(jnp.int32)
    p_y = jnp.take_along_axis(probs, idx, axis=1)[:, 0]
    mae = 1.0 - p_y
    if n_eff == 0:
        ce = -jnp.take_along_axis(logp, idx, axis=1)[:, 0]
        loss = ce + mae
    elif n_eff == 1:
        loss = mae
    else:
        x = 1.0 - p_y
        loss = jnp.zeros_like(x)
        pt = jnp.ones_like(x)
        for i in range(1, n_eff + 1):
            pt = pt * x
            loss = loss + pt / i
        loss = loss + mae
    if reduction == "mean":
        return loss.mean()
    return loss


if __name__ == "__main__":
    key = jax.random.PRNGKey(0)
    batch, num_classes = 64, 10

    k1, k2 = jax.random.split(key)
    # Native bf16 logits: the kernel DMAs them as-is and upcasts in-register.
    logits = jax.random.normal(k1, (batch, num_classes),
                               dtype=jnp.float32).astype(jnp.bfloat16)
    labels = jax.random.randint(k2, (batch,), 0, num_classes, dtype=jnp.int32)

    # Exercise all three PTCEplus branches (n_eff = 0, >=2, 1).
    for (n, t, epoch) in [(6, 10, 0), (6, 10, 3), (6, 10, 12)]:
        loss = ptceplus_loss(logits, labels, n=n, t=t, epoch=epoch)
        jax.block_until_ready(loss)
        ref = _reference_ptceplus(logits, labels, n=n, t=t, epoch=epoch)
        # tolerance covers the approximate EUP reciprocal used for 1/sum(exp)
        assert jnp.allclose(loss, ref, atol=5e-3, rtol=5e-3), (n, t, epoch, loss, ref)

    # reduction='none' path
    loss_none = ptceplus_loss(logits, labels, n=6, t=10, epoch=3, reduction="none")
    jax.block_until_ready(loss_none)
    ref_none = _reference_ptceplus(logits, labels, n=6, t=10, epoch=3,
                                   reduction="none")
    assert jnp.allclose(loss_none, ref_none, atol=5e-3, rtol=5e-3)

    # Multi-tile / padded-grid path (grid > 1, ragged N).
    k3, k4 = jax.random.split(k1)
    big_n = 600
    big_logits = jax.random.normal(k3, (big_n, num_classes),
                                   dtype=jnp.float32).astype(jnp.bfloat16)
    big_labels = jax.random.randint(k4, (big_n,), 0, num_classes, dtype=jnp.int32)
    loss_big = ptceplus_loss(big_logits, big_labels, n=6, t=10, epoch=3,
                             reduction="none", tile_n=256)
    jax.block_until_ready(loss_big)
    ref_big = _reference_ptceplus(big_logits, big_labels, n=6, t=10, epoch=3,
                                  reduction="none")
    assert loss_big.shape == (big_n,)
    assert jnp.allclose(loss_big, ref_big, atol=5e-3, rtol=5e-3)

    print("KERNEL_OK")
</pallas_src>

<mosaic_0001>
module attributes {stable_mosaic.version = 11 : i64} {
  func.func @_ptce_kernel(%arg0: i32, %arg1: memref<64x10xbf16, #tpu.memory_space<vmem>>, %arg2: memref<64x1xi32, #tpu.memory_space<vmem>>, %arg3: memref<64x1xf32, #tpu.memory_space<vmem>>) attributes {dimension_semantics = [#tpu.dimension_semantics<parallel>], iteration_bounds = array<i64: 1>, scalar_prefetch = 0 : i64, scratch_operands = 0 : i64, tpu.core_type = #tpu.core_type<tc>, window_params = [{transform_indices = @transform_0, window_bounds = array<i64: 64, 10>}, {transform_indices = @transform_1, window_bounds = array<i64: 64, 1>}, {transform_indices = @transform_2, window_bounds = array<i64: 64, 1>}]} {
    %c0 = arith.constant 0 : index
    %c0_0 = arith.constant 0 : index
    %0 = vector.load %arg1[%c0, %c0_0] : memref<64x10xbf16, #tpu.memory_space<vmem>>, vector<64x10xbf16>
    %1 = arith.extf %0 : vector<64x10xbf16> to vector<64x10xf32>
    %cst = arith.constant dense<0xFF800000> : vector<64xf32>
    %2 = vector.multi_reduction <maximumf>, %1, %cst [1] : vector<64x10xf32> to vector<64xf32>
    %3 = vector.shape_cast %2 : vector<64xf32> to vector<64x1xf32>
    %4 = vector.broadcast %3 : vector<64x1xf32> to vector<64x10xf32>
    %5 = arith.subf %1, %4 : vector<64x10xf32>
    %6 = math.exp %5 : vector<64x10xf32>
    %cst_1 = arith.constant dense<0.000000e+00> : vector<64xf32>
    %7 = vector.multi_reduction <add>, %6, %cst_1 [1] : vector<64x10xf32> to vector<64xf32>
    %8 = vector.shape_cast %7 : vector<64xf32> to vector<64x1xf32>
    %9 = tpu.iota {dimensions = array<i32: 1>} : vector<64x10xi32>
    %c0_2 = arith.constant 0 : index
    %c0_3 = arith.constant 0 : index
    %10 = vector.load %arg2[%c0_2, %c0_3] : memref<64x1xi32, #tpu.memory_space<vmem>>, vector<64x1xi32>
    %11 = vector.broadcast %10 : vector<64x1xi32> to vector<64x10xi32>
    %12 = arith.cmpi eq, %11, %9 : vector<64x10xi32>
    %cst_4 = arith.constant 0.000000e+00 : f32
    %13 = vector.broadcast %cst_4 : f32 to vector<64x10xf32>
    %14 = arith.select %12, %6, %13 : vector<64x10xi1>, vector<64x10xf32>
    %cst_5 = arith.constant dense<0.000000e+00> : vector<64xf32>
    %15 = vector.multi_reduction <add>, %14, %cst_5 [1] : vector<64x10xf32> to vector<64xf32>
    %16 = vector.shape_cast %15 : vector<64xf32> to vector<64x1xf32>
    %17 = tpu.reciprocal %8 {approx = true} : vector<64x1xf32> -> vector<64x1xf32>
    %18 = arith.mulf %16, %17 : vector<64x1xf32>
    %cst_6 = arith.constant 1.000000e+00 : f32
    %19 = vector.broadcast %cst_6 : f32 to vector<64x1xf32>
    %20 = arith.subf %19, %18 : vector<64x1xf32>
    %cst_7 = arith.constant 0.000000e+00 : f32
    %21 = vector.broadcast %cst_7 : f32 to vector<64x10xf32>
    %22 = arith.select %12, %1, %21 : vector<64x10xi1>, vector<64x10xf32>
    %cst_8 = arith.constant dense<0.000000e+00> : vector<64xf32>
    %23 = vector.multi_reduction <add>, %22, %cst_8 [1] : vector<64x10xf32> to vector<64xf32>
    %24 = vector.shape_cast %23 : vector<64xf32> to vector<64x1xf32>
    %25 = math.log %8 : vector<64x1xf32>
    %26 = arith.addf %25, %3 : vector<64x1xf32>
    %27 = arith.subf %26, %24 : vector<64x1xf32>
    %28 = arith.addf %27, %20 : vector<64x1xf32>
    %c0_9 = arith.constant 0 : index
    %c0_10 = arith.constant 0 : index
    %29 = vector.load %arg3[%c0_9, %c0_10] : memref<64x1xf32, #tpu.memory_space<vmem>>, vector<64x1xf32>
    tpu.vector_store %arg3[%c0_9, %c0_10], %28 {strides = array<i32>} : memref<64x1xf32, #tpu.memory_space<vmem>>, vector<64x1xf32>,
    return
  }
  func.func @transform_0(%arg0: i32) -> (i32, i32) {
    %c0_i32 = arith.constant 0 : i32
    %c0_i32_0 = arith.constant 0 : i32
    return %arg0, %c0_i32 : i32, i32
  }
  func.func @transform_1(%arg0: i32) -> (i32, i32) {
    %c0_i32 = arith.constant 0 : i32
    %c0_i32_0 = arith.constant 0 : i32
    return %arg0, %c0_i32 : i32, i32
  }
  func.func @transform_2(%arg0: i32) -> (i32, i32) {
    %c0_i32 = arith.constant 0 : i32
    %c0_i32_0 = arith.constant 0 : i32
    return %arg0, %c0_i32 : i32, i32
  }
}

</mosaic_0001>

<bundles_post_ra>
// kernel: tpu_custom_call.1
= control target key start
LH: loop header
LB: loop body
LE: loop exit
PB: predicated region body
PF: predicated region fallthrough
CT: control target
= control target key end

     0   :  { %vm27_vm0 = vcmask 80896   ;;  %v353_v2 = vmov 0   ;;  %v100_v35 = vlaneseq  ;;  %vm270_vm9 = vcmask 7168   ;;  %s605_s0 = inlined_call_operand.vmem [shape: bf16[64,10], index: 0, kind: input, shape index: {}]   ;;  %s606_s1 = inlined_call_operand.vmem [shape: s32[64,1], index: 1, kind: input, shape index: {}]   ;;  %s607_s2 = inlined_call_operand.vmem [shape: f32[64,1], index: 2, kind: output, shape index: {}]  }
   0x1   :  { %v299_v0 = vld [vmem:[%s605_s0 + $0x8] sm:$0xff]   ;;  %v284_v1 = vld [vmem:[%s605_s0] sm:$0xff]   ;;  %304 = vset.pattern.permute.xlu1 %v353_v2  ;;  %303 = vset.pattern.permute.xlu0 %v353_v2  ;;  %v300_v7 = vld [vmem:[%s605_s0 + $0x10] sm:$0xff]  }
   0x2   :  { %v375_v3 = vunpack.c.l.bf16 %v299_v0  ;;  %v377_v4 = vunpack.c.l.bf16 %v284_v1  ;;  %v379_v5 = vunpack.c.h.bf16 %v299_v0  ;;  %v286_v6 = vunpack.c.h.bf16 %v284_v1  ;;  %v301_v14 = vld [vmem:[%s605_s0 + $0x18] sm:$0xff]   ;;  %v103_v21 = vld [vmem:[%s606_s1 + $0x8] sm:$0xff]  ;;  %v104_v22 = vld [vmem:[%s606_s1 + $0x10] sm:$0xff] }
   0x3   :  { %v391_v12 = vunpack.c.h.bf16 %v300_v7  ;;  %v393_v13 = vunpack.c.l.bf16 %v300_v7  ;;  %v402_v17 = vunpack.c.h.bf16 %v301_v14  ;;  %v404_v18 = vunpack.c.l.bf16 %v301_v14  ;;  %v102_v23 = vld [vmem:[%s606_s1] sm:$0xff]  ;;  %v105_v24 = vld [vmem:[%s606_s1 + $0x18] sm:$0xff]  ;;  %v107_v26 = vld [vmem:[%s606_s1 + $0x28] sm:$0xff] }
   0x4   :  { %v34_v8 = vsel %vm27_vm0, %v375_v3, -inf  ;;  %v28_v9 = vsel %vm27_vm0, %v377_v4, -inf  ;;  %v37_v10 = vsel %vm27_vm0, %v379_v5, -inf  ;;  %v31_v11 = vsel %vm27_vm0, %v286_v6, -inf  ;;  %v106_v25 = vld [vmem:[%s606_s1 + $0x20] sm:$0xff]  ;;  %v108_v27 = vld [vmem:[%s606_s1 + $0x30] sm:$0xff] }
   0x5   :  { %35 = vmax.xlane.f32.xlu1 %v34_v8  ;;  %29 = vmax.xlane.f32.xlu0 %v28_v9  ;;  %v43_v15 = vsel %vm27_vm0, %v391_v12, -inf  ;;  %v40_v16 = vsel %vm27_vm0, %v393_v13, -inf  ;;  %v49_v19 = vsel %vm27_vm0, %v402_v17, -inf  ;;  %v46_v20 = vsel %vm27_vm0, %v404_v18, -inf  ;;  %v109_v28 = vld [vmem:[%s606_s1 + $0x38] sm:$0xff] }
   0x6   :  { %v448_v37 = vand.u32 127, %v100_v35 }
   0x9   :  { %38 = vmax.xlane.f32.xlu1 %v37_v10  ;;  %32 = vmax.xlane.f32.xlu0 %v31_v11 }
   0xd   :  { %44 = vmax.xlane.f32.xlu1 %v43_v15  ;;  %41 = vmax.xlane.f32.xlu0 %v40_v16 }
  0x11   :  { %50 = vmax.xlane.f32.xlu1 %v49_v19  ;;  %47 = vmax.xlane.f32.xlu0 %v46_v20 }
  0x22   :  { %114 = vperm.xlu1 %304, %v103_v21  }
  0x26   :  { %117 = vperm.xlu1 %304, %v104_v22  }
  0x27   :  { %111 = vperm.xlu0 %303, %v102_v23  }
  0x2a   :  { %120 = vperm.xlu1 %304, %v105_v24  }
  0x2e   :  { %123 = vperm.xlu1 %304, %v106_v25  }
  0x32   :  { %126 = vperm.xlu1 %304, %v107_v26  }
  0x36   :  { %129 = vperm.xlu1 %304, %v108_v27  }
  0x3a   :  { %132 = vperm.xlu1 %304, %v109_v28  }
  0x92   :  { %v434_v29 = vpop.xlane.xlu1 %35  ;;  %v436_v30 = vpop.xlane.xlu0 %29 }
  0x93   :  { %v54_v41 = vsub.f32 %v375_v3, %v434_v29  ;;  %v52_v42 = vsub.f32 %v377_v4, %v436_v30 }
  0x95   :  { %v64_v48 = vmul.f32 1.442695, %v54_v41  ;;  %v60_v50 = vmul.f32 1.442695, %v52_v42 }
  0x96   :  { %v438_v31 = vpop.xlane.xlu1 %38  ;;  %v440_v32 = vpop.xlane.xlu0 %32 }
  0x97   :  { %v53_v39 = vsub.f32 %v286_v6, %v440_v32  ;;  %v55_v49 = vsub.f32 %v379_v5, %v438_v31 }
  0x99   :  { %v62_v45 = vmul.f32 1.442695, %v53_v39  ;;  %v66_v56 = vmul.f32 1.442695, %v55_v49 }
  0x9a   :  { %v442_v33 = vpop.xlane.xlu1 %44  ;;  %v444_v34 = vpop.xlane.xlu0 %41 }
  0x9b   :  { %v56_v51 = vsub.f32 %v393_v13, %v444_v34  ;;  %305 = vpow2.f32 %v62_v45  ;;  %v57_v57 = vsub.f32 %v391_v12, %v442_v33 }
  0x9c   :  { %307 = vpow2.f32 %v64_v48 }
  0x9d   :  { %309 = vpow2.f32 %v60_v50  ;;  %v68_v58 = vmul.f32 1.442695, %v56_v51  ;;  %v70_v0 = vmul.f32 1.442695, %v57_v57 }
  0x9e   :  { %v446_v36 = vpop.xlane.xlu1 %50  ;;  %v450_v38 = vpop.xlane.xlu0 %47  ;;  %311 = vpow2.f32 %v66_v56 }
  0x9f   :  { %v58_v59 = vsub.f32 %v404_v18, %v450_v38  ;;  %v59_v1 = vsub.f32 %v402_v17, %v446_v36  ;;  %313 = vpow2.f32 %v68_v58 }
  0xa0   :  { %315 = vpow2.f32 %v70_v0 }
  0xa1   :  { %v72_v2 = vmul.f32 1.442695, %v58_v59  ;;  %v74_v7 = vmul.f32 1.442695, %v59_v1 }
  0xa2   :  { %v453_v40 = vpop.permute.xlu1 %114 }
  0xa3   :  { %vm135_vm1 = vcmp.eq.s32.totalorder %v453_v40, %v448_v37  ;;  %317 = vpow2.f32 %v72_v2 }
  0xa4   :  { %v199_v43 = vsel %vm135_vm1, %v286_v6, 0.0  ;;  %319 = vpow2.f32 %v74_v7 }
  0xa5   :  { %v209_v44 = vsel %vm27_vm0, %v199_v43, 0.0  ;;  %v306_v6 = vpop.eup %305 }
  0xa6   :  { %v465_v46 = vpop.permute.xlu1 %117  ;;  %210 = vadd.xlane.f32.xlu1 %v209_v44  ;;  %v467_v47 = vpop.permute.xlu0 %111  ;;  %v79_v11 = vsel %vm27_vm0, %v306_v6, 0.0  ;;  %v143_v39 = vsel %vm135_vm1, %v306_v6, 0.0 }
  0xa7   :  { %vm136_vm2 = vcmp.eq.s32.totalorder %v465_v46, %v448_v37  ;;  %vm134_vm3 = vcmp.eq.s32.totalorder %v467_v47, %v448_v37  ;;  %v308_v9 = vpop.eup %307  ;;  %v153_v42 = vsel %vm27_vm0, %v143_v39, 0.0 }
  0xa8   :  { %v198_v52 = vsel %vm134_vm3, %v377_v4, 0.0  ;;  %v200_v55 = vsel %vm136_vm2, %v375_v3, 0.0  ;;  %v82_v16 = vsel %vm27_vm0, %v308_v9, 0.0  ;;  %v144_v41 = vsel %vm136_vm2, %v308_v9, 0.0 }
  0xa9   :  { %v206_v53 = vsel %vm27_vm0, %v198_v52, 0.0  ;;  %v212_v62 = vsel %vm27_vm0, %v200_v55, 0.0  ;;  %v156_v43 = vsel %vm27_vm0, %v144_v41, 0.0 }
  0xaa   :  { %v482_v54 = vpop.permute.xlu1 %120  ;;  %207 = vadd.xlane.f32.xlu0 %v206_v53 }
  0xab   :  { %vm137_vm4 = vcmp.eq.s32.totalorder %v482_v54, %v448_v37 }
  0xac   :  { %v201_v60 = vsel %vm137_vm4, %v379_v5, 0.0 }
  0xad   :  { %v215_v61 = vsel %vm27_vm0, %v201_v60, 0.0 }
  0xae   :  { %v124_v63 = vpop.permute.xlu1 %123  ;;  %216 = vadd.xlane.f32.xlu1 %v215_v61  ;;  %213 = vadd.xlane.f32.xlu0 %v212_v62 }
  0xaf   :  { %vm138_vm5 = vcmp.eq.s32.totalorder %v124_v63, %v448_v37 }
  0xb0   :  { %v202_v3 = vsel %vm138_vm5, %v393_v13, 0.0  ;;  %v310_v13 = vpop.eup %309 }
  0xb1   :  { %v218_v4 = vsel %vm27_vm0, %v202_v3, 0.0  ;;  %v312_v14 = vpop.eup %311  ;;  %v76_v15 = vsel %vm27_vm0, %v310_v13, 0.0  ;;  %v142_v26 = vsel %vm134_vm3, %v310_v13, 0.0 }
  0xb2   :  { %v127_v5 = vpop.permute.xlu1 %126  ;;  %219 = vadd.xlane.f32.xlu0 %v218_v4  ;;  %v314_v19 = vpop.eup %313  ;;  %v150_v28 = vsel %vm27_vm0, %v142_v26, 0.0  ;;  %v145_v44 = vsel %vm137_vm4, %v312_v14, 0.0 }
  0xb3   :  { %vm139_vm6 = vcmp.eq.s32.totalorder %v127_v5, %v448_v37  ;;  %v316_v20 = vpop.eup %315  ;;  %v88_v21 = vsel %vm27_vm0, %v314_v19, 0.0  ;;  %v146_v45 = vsel %vm138_vm5, %v314_v19, 0.0  ;;  %v159_v47 = vsel %vm27_vm0, %v145_v44, 0.0 }
  0xb4   :  { %v203_v8 = vsel %vm139_vm6, %v391_v12, 0.0  ;;  %v85_v12 = vsel %vm27_vm0, %v312_v14, 0.0  ;;  %v318_v22 = vpop.eup %317  ;;  %v91_v23 = vsel %vm27_vm0, %v316_v20, 0.0  ;;  %v162_v46 = vsel %vm27_vm0, %v146_v45, 0.0 }
  0xb5   :  { %v221_v10 = vsel %vm27_vm0, %v203_v8, 0.0  ;;  %v94_v24 = vsel %vm27_vm0, %v318_v22, 0.0  ;;  %v320_v25 = vpop.eup %319  ;;  %v147_v48 = vsel %vm139_vm6, %v316_v20, 0.0 }
  0xb6   :  { %222 = vadd.xlane.f32.xlu1 %v221_v10  ;;  %80 = vadd.xlane.f32.xlu0 %v79_v11  ;;  %v97_v27 = vsel %vm27_vm0, %v320_v25, 0.0  ;;  %v130_v35 = vpop.permute.xlu1 %129  ;;  %v165_v50 = vsel %vm27_vm0, %v147_v48, 0.0 }
  0xb7   :  { %vm140_vm7 = vcmp.eq.s32.totalorder %v130_v35, %v448_v37 }
  0xb8   :  { %v148_v49 = vsel %vm140_vm7, %v318_v22, 0.0  ;;  %v204_v53 = vsel %vm140_vm7, %v404_v18, 0.0 }
  0xb9   :  { %v168_v51 = vsel %vm27_vm0, %v148_v49, 0.0  ;;  %v224_v55 = vsel %vm27_vm0, %v204_v53, 0.0 }
  0xba   :  { %77 = vadd.xlane.f32.xlu1 %v76_v15  ;;  %83 = vadd.xlane.f32.xlu0 %v82_v16  ;;  %v133_v40 = vpop.permute.xlu1 %132 }
  0xbb   :  { %vm141_vm8 = vcmp.eq.s32.totalorder %v133_v40, %v448_v37 }
  0xbc   :  { %v149_v52 = vsel %vm141_vm8, %v320_v25, 0.0  ;;  %v205_v56 = vsel %vm141_vm8, %v402_v17, 0.0 }
  0xbd   :  { %v171_v54 = vsel %vm27_vm0, %v149_v52, 0.0  ;;  %v227_v57 = vsel %vm27_vm0, %v205_v56, 0.0 }
  0xbe   :  { %86 = vadd.xlane.f32.xlu1 %v85_v12  ;;  %89 = vadd.xlane.f32.xlu0 %v88_v21 }
  0xc2   :  { %92 = vadd.xlane.f32.xlu1 %v91_v23  ;;  %95 = vadd.xlane.f32.xlu0 %v94_v24 }
  0xc6   :  { %98 = vadd.xlane.f32.xlu1 %v97_v27  ;;  %151 = vadd.xlane.f32.xlu0 %v150_v28 }
  0xca   :  { %154 = vadd.xlane.f32.xlu1 %v153_v42  ;;  %157 = vadd.xlane.f32.xlu0 %v156_v43 }
  0xce   :  { %160 = vadd.xlane.f32.xlu1 %v159_v47  ;;  %163 = vadd.xlane.f32.xlu0 %v162_v46 }
  0xd2   :  { %166 = vadd.xlane.f32.xlu1 %v165_v50  ;;  %169 = vadd.xlane.f32.xlu0 %v168_v51 }
  0xd6   :  { %172 = vadd.xlane.f32.xlu1 %v171_v54  ;;  %225 = vadd.xlane.f32.xlu0 %v224_v55 }
  0xda   :  { %228 = vadd.xlane.f32.xlu1 %v227_v57 }
 0x133   :  { %v550_v58 = vpop.xlane.xlu1 %210 }
 0x137   :  { %v208_v37 = vpop.xlane.xlu0 %207 }
 0x13b   :  { %v552_v59 = vpop.xlane.xlu0 %213  ;;  %v554_v60 = vpop.xlane.xlu1 %216 }
 0x13f   :  { %v556_v61 = vpop.xlane.xlu0 %219 }
 0x143   :  { %v558_v18 = vpop.xlane.xlu1 %222  ;;  %v81_v62 = vpop.xlane.xlu0 %80 }
 0x144   :  { %321 = vlog2.f32 %v81_v62 }
 0x147   :  { %v78_v63 = vpop.xlane.xlu1 %77  ;;  %v84_v0 = vpop.xlane.xlu0 %83 }
 0x148   :  { %323 = vrcp.f32 %v78_v63 }
 0x149   :  { %325 = vlog2.f32 %v78_v63 }
 0x14a   :  { %327 = vrcp.f32 %v81_v62 }
 0x14b   :  { %329 = vlog2.f32 %v84_v0  ;;  %v87_v17 = vpop.xlane.xlu1 %86  ;;  %v90_v1 = vpop.xlane.xlu0 %89 }
 0x14c   :  { %331 = vrcp.f32 %v84_v0 }
 0x14d   :  { %333 = vlog2.f32 %v87_v17 }
 0x14e   :  { %335 = vrcp.f32 %v87_v17  ;;  %v322_v2 = vpop.eup %321 }
 0x14f   :  { %337 = vlog2.f32 %v90_v1  ;;  %v93_v3 = vpop.xlane.xlu1 %92  ;;  %v96_v4 = vpop.xlane.xlu0 %95  ;;  %v233_v6 = vmul.f32 0.6931472, %v322_v2 }
 0x150   :  { %339 = vrcp.f32 %v90_v1 }
 0x151   :  { %341 = vlog2.f32 %v93_v3  ;;  %v247_v16 = vadd.f32 %v233_v6, %v440_v32 }
 0x152   :  { %v324_v5 = vpop.eup %323  ;;  %343 = vrcp.f32 %v93_v3 }
 0x153   :  { %v326_v7 = vpop.eup %325  ;;  %345 = vlog2.f32 %v96_v4  ;;  %v99_v8 = vpop.xlane.xlu1 %98 }
 0x154   :  { %v152_v9 = vpop.xlane.xlu0 %151  ;;  %v328_v10 = vpop.eup %327  ;;  %v231_v11 = vmul.f32 0.6931472, %v326_v7  ;;  %347 = vrcp.f32 %v96_v4 }
 0x155   :  { %v182_v13 = vmul.f32 %v324_v5, %v152_v9  ;;  %v330_v14 = vpop.eup %329  ;;  %349 = vlog2.f32 %v99_v8 }
 0x156   :  { %v332_v15 = vpop.eup %331  ;;  %v246_v19 = vadd.f32 %v231_v11, %v436_v30  ;;  %v235_v20 = vmul.f32 0.6931472, %v330_v14  ;;  %351 = vrcp.f32 %v99_v8  ;;  %v255_v30 = vsub.f32 %v247_v16, %v550_v58 }
 0x157   :  { %v190_v12 = vsub.f32 1.0, %v182_v13  ;;  %v334_v21 = vpop.eup %333  ;;  %v155_v22 = vpop.xlane.xlu1 %154 }
 0x158   :  { %v158_v23 = vpop.xlane.xlu0 %157  ;;  %v336_v24 = vpop.eup %335  ;;  %v248_v25 = vadd.f32 %v235_v20, %v434_v29  ;;  %v237_v26 = vmul.f32 0.6931472, %v334_v21  ;;  %v254_v27 = vsub.f32 %v246_v19, %v208_v37  ;;  %v183_v28 = vmul.f32 %v328_v10, %v155_v22 }
 0x159   :  { %v338_v35 = vpop.eup %337  ;;  %v184_v39 = vmul.f32 %v332_v15, %v158_v23 }
 0x15a   :  { %v340_v41 = vpop.eup %339  ;;  %v239_v42 = vmul.f32 0.6931472, %v338_v35  ;;  %v262_v32 = vadd.f32 %v254_v27, %v190_v12  ;;  %v191_v43 = vsub.f32 1.0, %v183_v28  ;;  %v249_v45 = vadd.f32 %v237_v26, %v438_v31 }
 0x15b   :  { %v342_v44 = vpop.eup %341  ;;  %v256_v40 = vsub.f32 %v248_v25, %v552_v59  ;;  %v192_v47 = vsub.f32 1.0, %v184_v39  ;;  %v161_v29 = vpop.xlane.xlu1 %160 }
 0x15c   :  { %v164_v46 = vpop.xlane.xlu0 %163  ;;  %v344_v48 = vpop.eup %343  ;;  %v250_v49 = vadd.f32 %v239_v42, %v444_v34  ;;  %v241_v50 = vmul.f32 0.6931472, %v342_v44  ;;  %271 = vst.msk [vmem:[%s607_s2] sm:$0xff] %vm270_vm9, %v262_v32  ;;  %v263_v51 = vadd.f32 %v255_v30, %v191_v43  ;;  %v185_v54 = vmul.f32 %v336_v24, %v161_v29 }
 0x15d   :  { %v346_v52 = vpop.eup %345  ;;  %v264_v53 = vadd.f32 %v256_v40, %v192_v47  ;;  %v186_v55 = vmul.f32 %v340_v41, %v164_v46  ;;  %v257_v37 = vsub.f32 %v249_v45, %v554_v60 }
 0x15e   :  { %v348_v31 = vpop.eup %347  ;;  %v251_v56 = vadd.f32 %v241_v50, %v442_v33  ;;  %272 = vst.msk [vmem:[%s607_s2 + $0x8] sm:$0xff] %vm270_vm9, %v263_v51  ;;  %v243_v34 = vmul.f32 0.6931472, %v346_v52  ;;  %v193_v58 = vsub.f32 1.0, %v185_v54  ;;  %v258_v59 = vsub.f32 %v250_v49, %v556_v61 }
 0x15f   :  { %v350_v57 = vpop.eup %349  ;;  %273 = vst.msk [vmem:[%s607_s2 + $0x10] sm:$0xff] %vm270_vm9, %v264_v53  ;;  %v194_v62 = vsub.f32 1.0, %v186_v55  ;;  %v167_v63 = vpop.xlane.xlu1 %166 }
 0x160   :  { %v170_v33 = vpop.xlane.xlu0 %169  ;;  %v187_v0 = vmul.f32 %v344_v48, %v167_v63  ;;  %v265_v1 = vadd.f32 %v257_v37, %v193_v58  ;;  %v259_v3 = vsub.f32 %v251_v56, %v558_v18  ;;  %v252_v5 = vadd.f32 %v243_v34, %v450_v38  ;;  %v352_v7 = vpop.eup %351 }
 0x161   :  { %v188_v17 = vmul.f32 %v348_v31, %v170_v33  ;;  %v266_v2 = vadd.f32 %v258_v59, %v194_v62  ;;  %v245_v6 = vmul.f32 0.6931472, %v350_v57 }
 0x162   :  { %v195_v4 = vsub.f32 1.0, %v187_v0  ;;  %274 = vst.msk [vmem:[%s607_s2 + $0x18] sm:$0xff] %vm270_vm9, %v265_v1 }
 0x163   :  { %275 = vst.msk [vmem:[%s607_s2 + $0x20] sm:$0xff] %vm270_vm9, %v266_v2  ;;  %v173_v60 = vpop.xlane.xlu1 %172  ;;  %v196_v9 = vsub.f32 1.0, %v188_v17  ;;  %v253_v11 = vadd.f32 %v245_v6, %v446_v36 }
 0x164   :  { %v226_v61 = vpop.xlane.xlu0 %225  ;;  %v267_v8 = vadd.f32 %v259_v3, %v195_v4  ;;  %v189_v18 = vmul.f32 %v352_v7, %v173_v60 }
 0x165   :  { %v260_v10 = vsub.f32 %v252_v5, %v226_v61 }
 0x166   :  { %276 = vst.msk [vmem:[%s607_s2 + $0x28] sm:$0xff] %vm270_vm9, %v267_v8  ;;  %v197_v14 = vsub.f32 1.0, %v189_v18 }
 0x167   :  { %v268_v38 = vadd.f32 %v260_v10, %v196_v9  ;;  %v229_v13 = vpop.xlane.xlu1 %228 }
 0x168   :  { %v261_v15 = vsub.f32 %v253_v11, %v229_v13 }
 0x169   :  { %277 = vst.msk [vmem:[%s607_s2 + $0x30] sm:$0xff] %vm270_vm9, %v268_v38 }
 0x16a   :  { %v269_v16 = vadd.f32 %v261_v15, %v197_v14 }
 0x16c   :  { %278 = vst.msk [vmem:[%s607_s2 + $0x38] sm:$0xff] %vm270_vm9, %v269_v16 }

</bundles_post_ra>
